<compile_context>
chip_gen: v5e
topology: v5e:2x2
jax: 0.10.0
libtpu: 0.0.40
codegen_flags: <defaults>
</compile_context>

<pallas_src>
import math

import jax
import jax.numpy as jnp
from jax import lax
from jax.experimental import pallas as pl
from jax.experimental.pallas import tpu as pltpu


# ---------------------------------------------------------------------------
# Generation-aware sizing
# ---------------------------------------------------------------------------
def _query_vmem_capacity():
    try:
        return int(pltpu.get_tpu_info().vmem_capacity_bytes)
    except Exception:
        return 64 << 20            # conservative default (v7x per-core VMEM)


_VMEM_CAP = _query_vmem_capacity()
_VMEM_LIMIT = max(32 << 20, (_VMEM_CAP * 3) // 4)      # leave headroom below physical
_ROW_BLOCK = 512 if _VMEM_CAP >= (100 << 20) else 256  # 256 on v5e/v7x, 512 on v6e


def _mosaic(*sem):
    return pltpu.CompilerParams(dimension_semantics=sem, vmem_limit_bytes=_VMEM_LIMIT)


def _row_block(n):
    return n if n <= _ROW_BLOCK else _ROW_BLOCK


def _pick_time_chunk(s, target=32):
    """Returns (t_chunk, s_padded).  Prefers an exact divisor of S <= target; otherwise pads S
    up to a multiple of `target` (pad rows of P are zero -> recurrence stays exact)."""
    if s <= target:
        return s, s
    for t in range(target, 0, -1):
        if s % t == 0 and t >= target // 2:
            return t, s
    s_pad = pl.cdiv(s, target) * target
    return target, s_pad


def _pick_batch_block(b, target=64):
    """Full batch if small; otherwise a multiple-of-8 divisor (bounds vreg pressure)."""
    if b <= target:
        return b
    for cand in range(target - (target % 8), 7, -8):
        if b % cand == 0:
            return cand
    return b


# ---------------------------------------------------------------------------
# Kernels
# ---------------------------------------------------------------------------
def _make_proj_kernel(n_in):
    """P = sum_k x_k @ W_ihT_k + b   (all timesteps at once, one direction per grid row)."""
    def kernel(*refs):
        xs = refs[:n_in]                        # each (nb, F_k)   bf16
        ws = refs[n_in:2 * n_in]                # each (F_k, H)    bf16 (direction squeezed)
        b_ref = refs[2 * n_in]                  # (1, H)           f32  (b_ih + b_hh folded)
        o_ref = refs[2 * n_in + 1]              # (nb, H)          bf16
        acc = jnp.dot(xs[0][...], ws[0][...], preferred_element_type=jnp.float32)
        for k in range(1, n_in):
            acc = acc + jnp.dot(xs[k][...], ws[k][...],
                                preferred_element_type=jnp.float32)
        o_ref[...] = (acc + b_ref[...]).astype(o_ref.dtype)
    return kernel


def _make_rnn_kernel(t_chunk, bidir, unroll):
    """tanh recurrence over one time chunk; fwd/bwd fused; h carried in f32 VMEM scratch;
    W_hh^T single-buffered in VMEM scratch (manual DMA once per batch block)."""
    # TODO(synk): explicit MXU driving (pltpu.matmul_push_rhs/acc_lhs) to keep W_hh resident in
    # the MXU staging registers across the chunk; jnp.dot re-pushes the stationary RHS per step.
    if bidir:
        def kernel(p_f_ref, p_b_ref, whh_hbm, out_f_ref, out_b_ref,
                   h_f, h_b, w_vmem, dma_sem):
            @pl.when(pl.program_id(1) == 0)          # start of this batch-block's time sweep
            def _():
                cp = pltpu.make_async_copy(whh_hbm, w_vmem, dma_sem)
                cp.start()
                cp.wait()
                h_f[...] = jnp.zeros_like(h_f)
                h_b[...] = jnp.zeros_like(h_b)

            wf = w_vmem[0]                            # (H, H) bf16, resident
            wb = w_vmem[1]

            def body(i, carry):
                hf, hb = carry
                # forward direction: chunk walked front-to-back
                hf = jnp.tanh(
                    p_f_ref[i].astype(jnp.float32)
                    + jnp.dot(hf.astype(jnp.bfloat16), wf,
                              preferred_element_type=jnp.float32))
                out_f_ref[i] = hf.astype(out_f_ref.dtype)
                # backward direction: chunk walked back-to-front (its blocks are already
                # selected in reverse chunk order by the index_map -> no jnp.flip anywhere)
                j = t_chunk - 1 - i
                hb = jnp.tanh(
                    p_b_ref[j].astype(jnp.float32)
                    + jnp.dot(hb.astype(jnp.bfloat16), wb,
                              preferred_element_type=jnp.float32))
                out_b_ref[j] = hb.astype(out_b_ref.dtype)
                return hf, hb

            hf, hb = lax.fori_loop(0, t_chunk, body, (h_f[...], h_b[...]),
                                   unroll=unroll)
            h_f[...] = hf
            h_b[...] = hb
        return kernel

    def kernel(p_f_ref, whh_hbm, out_f_ref, h_f, w_vmem, dma_sem):
        @pl.when(pl.program_id(1) == 0)
        def _():
            cp = pltpu.make_async_copy(whh_hbm, w_vmem, dma_sem)
            cp.start()
            cp.wait()
            h_f[...] = jnp.zeros_like(h_f)

        wf = w_vmem[0]

        def body(i, hf):
            hf = jnp.tanh(
                p_f_ref[i].astype(jnp.float32)
                + jnp.dot(hf.astype(jnp.bfloat16), wf,
                          preferred_element_type=jnp.float32))
            out_f_ref[i] = hf.astype(out_f_ref.dtype)
            return hf

        h_f[...] = lax.fori_loop(0, t_chunk, body, h_f[...], unroll=unroll)
    return kernel


def _make_fc_kernel(n_in):
    """out(C, nb) = sum_k W_k(C,H) @ x_k(nb,H)^T + b(C,1) -- lane-dense (long axis last)."""
    # TODO(synk): for the unidirectional last layer this could be fused into the recurrence
    # epilogue to save one write+read of the final hidden sequence.
    def kernel(*refs):
        xs = refs[:n_in]                        # (nb, H) bf16
        ws = refs[n_in:2 * n_in]                # (C, H)  bf16
        b_ref = refs[2 * n_in]                  # (C, 1)  f32
        o_ref = refs[2 * n_in + 1]              # (C, nb) f32
        acc = lax.dot_general(ws[0][...], xs[0][...],
                              dimension_numbers=(((1,), (1,)), ((), ())),
                              preferred_element_type=jnp.float32)
        for k in range(1, n_in):
            acc = acc + lax.dot_general(ws[k][...], xs[k][...],
                                        dimension_numbers=(((1,), (1,)), ((), ())),
                                        preferred_element_type=jnp.float32)
        o_ref[...] = (acc + b_ref[...]).astype(o_ref.dtype)
    return kernel


# ---------------------------------------------------------------------------
# pallas_call wrappers
# ---------------------------------------------------------------------------
def input_projection(x_slabs, w_t_stacks, b_stack):
    """x_slabs: list of (N, F_k) bf16; w_t_stacks: list of (ND, F_k, H) bf16; b_stack: (ND,1,H) f32.
    Returns P: (ND, N, H) bf16."""
    n_in = len(x_slabs)
    N = x_slabs[0].shape[0]
    ND, _, H = w_t_stacks[0].shape
    nb = _row_block(N)

    in_specs = [pl.BlockSpec((nb, x.shape[1]), lambda d, i: (i, 0)) for x in x_slabs]
    in_specs += [pl.BlockSpec((pl.Squeezed(), w.shape[1], H), lambda d, i: (d, 0, 0))
                 for w in w_t_stacks]
    in_specs.append(pl.BlockSpec((pl.Squeezed(), 1, H), lambda d, i: (d, 0, 0)))
    out_spec = pl.BlockSpec((pl.Squeezed(), nb, H), lambda d, i: (d, i, 0))

    return pl.pallas_call(
        _make_proj_kernel(n_in),
        out_shape=jax.ShapeDtypeStruct((ND, N, H), jnp.bfloat16),
        grid_spec=pltpu.PrefetchScalarGridSpec(
            num_scalar_prefetch=0,
            grid=(ND, pl.cdiv(N, nb)),
            in_specs=in_specs,
            out_specs=out_spec),
        compiler_params=_mosaic("parallel", "parallel"),
    )(*x_slabs, *w_t_stacks, b_stack)


def rnn_recurrence(p4d, whhT_stack, *, bidir, t_chunk):
    """p4d: (ND, S_pad, B, H) bf16 projection (bias folded, zero-padded tail);
    whhT_stack: (ND, H, H) bf16.  Returns per-direction hidden sequences, each (S_pad,B,H) bf16."""
    ND, S, B, H = p4d.shape
    nc = S // t_chunk
    bb = _pick_batch_block(B)
    n_bb = B // bb
    unroll = t_chunk if t_chunk <= 8 else 8

    spec_pf = pl.BlockSpec((pl.Squeezed(), t_chunk, bb, H), lambda b, c: (0, c, b, 0))
    spec_w = pl.BlockSpec(memory_space=pl.ANY)           # manual DMA -> single-buffered
    spec_of = pl.BlockSpec((t_chunk, bb, H), lambda b, c: (c, b, 0))

    common_scratch = [pltpu.VMEM((ND, H, H), jnp.bfloat16),
                      pltpu.SemaphoreType.DMA(())]

    if bidir:
        spec_pb = pl.BlockSpec((pl.Squeezed(), t_chunk, bb, H),
                               lambda b, c: (1, nc - 1 - c, b, 0))
        spec_ob = pl.BlockSpec((t_chunk, bb, H), lambda b, c: (nc - 1 - c, b, 0))
        return pl.pallas_call(
            _make_rnn_kernel(t_chunk, True, unroll),
            out_shape=(jax.ShapeDtypeStruct((S, B, H), jnp.bfloat16),
                       jax.ShapeDtypeStruct((S, B, H), jnp.bfloat16)),
            grid_spec=pltpu.PrefetchScalarGridSpec(
                num_scalar_prefetch=0,
                grid=(n_bb, nc),
                in_specs=[spec_pf, spec_pb, spec_w],
                out_specs=(spec_of, spec_ob),
                scratch_shapes=[pltpu.VMEM((bb, H), jnp.float32),
                                pltpu.VMEM((bb, H), jnp.float32)] + common_scratch),
            compiler_params=_mosaic("parallel", "arbitrary"),   # batch shardable, time sequential
        )(p4d, p4d, whhT_stack)

    out = pl.pallas_call(
        _make_rnn_kernel(t_chunk, False, unroll),
        out_shape=jax.ShapeDtypeStruct((S, B, H), jnp.bfloat16),
        grid_spec=pltpu.PrefetchScalarGridSpec(
            num_scalar_prefetch=0,
            grid=(n_bb, nc),
            in_specs=[spec_pf, spec_w],
            out_specs=spec_of,
            scratch_shapes=[pltpu.VMEM((bb, H), jnp.float32)] + common_scratch),
        compiler_params=_mosaic("parallel", "arbitrary"),
    )(p4d, whhT_stack)
    return (out,)


def fc_apply(x_slabs, w_slabs, b_col):
    """x_slabs: list of (N, H) bf16; w_slabs: list of (C, H) bf16; b_col: (C,1) f32 -> (C, N) f32."""
    n_in = len(x_slabs)
    N = x_slabs[0].shape[0]
    C = w_slabs[0].shape[0]
    nb = _row_block(N)

    in_specs = [pl.BlockSpec((nb, x.shape[1]), lambda i: (i, 0)) for x in x_slabs]
    in_specs += [pl.BlockSpec((C, w.shape[1]), lambda i: (0, 0)) for w in w_slabs]
    in_specs.append(pl.BlockSpec((C, 1), lambda i: (0, 0)))

    return pl.pallas_call(
        _make_fc_kernel(n_in),
        out_shape=jax.ShapeDtypeStruct((C, N), jnp.float32),
        grid_spec=pltpu.PrefetchScalarGridSpec(
            num_scalar_prefetch=0,
            grid=(pl.cdiv(N, nb),),
            in_specs=in_specs,
            out_specs=pl.BlockSpec((C, nb), lambda i: (0, i))),
        compiler_params=_mosaic("parallel"),
    )(*x_slabs, *w_slabs, b_col)


# ---------------------------------------------------------------------------
# Parameter construction (PyTorch-style uniform init) and one-time packing
# ---------------------------------------------------------------------------
def init_params(key, cfg):
    c_in, c_out = cfg["c_in"], cfg["c_out"]
    H, n_layers = cfg["hidden_size"], cfg["n_layers"]
    num_dirs = 2 if cfg["bidirectional"] else 1
    use_bias = cfg["bias"]
    k = 1.0 / math.sqrt(H)

    params = {"layers": []}
    for layer in range(n_layers):
        in_size = c_in if layer == 0 else H * num_dirs
        dirs = []
        for _ in range(num_dirs):
            key, k1, k2, k3, k4 = jax.random.split(key, 5)
            w_ih = jax.random.uniform(k1, (H, in_size), jnp.float32, -k, k)
            w_hh = jax.random.uniform(k2, (H, H), jnp.float32, -k, k)
            if use_bias:
                b_ih = jax.random.uniform(k3, (H,), jnp.float32, -k, k)
                b_hh = jax.random.uniform(k4, (H,), jnp.float32, -k, k)
            else:
                b_ih = jnp.zeros((H,), jnp.float32)
                b_hh = jnp.zeros((H,), jnp.float32)
            dirs.append((w_ih, w_hh, b_ih, b_hh))
        params["layers"].append(dirs)

    D = H * num_dirs
    kf = 1.0 / math.sqrt(D)
    key, k1, k2 = jax.random.split(key, 3)
    params["fc_w"] = jax.random.uniform(k1, (c_out, D), jnp.float32, -kf, kf)
    params["fc_b"] = jax.random.uniform(k2, (c_out,), jnp.float32, -kf, kf)
    return params


def pack_params(params, cfg):
    """One-time host-side packing: W_ih^T per input slab (bf16), b_ih+b_hh folded (f32),
    W_hh^T stacked (bf16), fc_w split into per-direction bf16 slabs."""
    H = cfg["hidden_size"]
    c_in = cfg["c_in"]
    num_dirs = 2 if cfg["bidirectional"] else 1

    packed_layers = []
    for layer_idx, dirs in enumerate(params["layers"]):
        in_sizes = [c_in] if layer_idx == 0 else [H] * num_dirs
        w_t_stacks, off = [], 0
        for fk in in_sizes:
            w_t_stacks.append(
                jnp.stack([d[0][:, off:off + fk].T for d in dirs]).astype(jnp.bfloat16))
            off += fk
        b_stack = jnp.stack([(d[2] + d[3]).reshape(1, H) for d in dirs]).astype(jnp.float32)
        whhT = jnp.stack([d[1].T for d in dirs]).astype(jnp.bfloat16)
        packed_layers.append({"w_t": w_t_stacks, "b": b_stack, "whhT": whhT})

    C = params["fc_w"].shape[0]
    fc_w_slabs = [params["fc_w"][:, k * H:(k + 1) * H].astype(jnp.bfloat16)
                  for k in range(num_dirs)]
    fc_b = params["fc_b"].reshape(C, 1).astype(jnp.float32)
    return {"layers": packed_layers, "fc_w": fc_w_slabs, "fc_b": fc_b}


# ---------------------------------------------------------------------------
# Forward pass (mirrors _RNN_Base.forward, eval mode)
# ---------------------------------------------------------------------------
def rnn_base_forward(packed, x, cfg):
    """x: (B, c_in, S) -> (B, c_out, S)"""
    B, _, S = x.shape
    bidir = cfg["bidirectional"]
    H = cfg["hidden_size"]
    nd = 2 if bidir else 1
    t_chunk, s_pad = _pick_time_chunk(S)

    # x.transpose(2, 1): (B, S, c_in); kernels consume time-major rows (S*B, feat), bf16 storage.
    x_tb = jnp.transpose(x, (2, 0, 1)).astype(jnp.bfloat16)          # (S, B, c_in)
    slabs = [x_tb.reshape(S * B, -1)]

    for lp in packed["layers"]:
        p = input_projection(slabs, lp["w_t"], lp["b"])              # (ND, S*B, H) bf16
        p4 = p.reshape(nd, S, B, H)
        if s_pad != S:
            # zero-pad time so the chunked recurrence has no tail; zero P keeps the backward
            # chain's hidden exactly zero through the pad region.
            p4 = jnp.pad(p4, ((0, 0), (0, s_pad - S), (0, 0), (0, 0)))
        outs = rnn_recurrence(p4, lp["whhT"], bidir=bidir, t_chunk=t_chunk)
        if s_pad != S:
            outs = [o[:S] for o in outs]
        slabs = [o.reshape(S * B, H) for o in outs]
        # TODO(synk): rnn_dropout between stacked layers is identity (eval mode).

    # fc(dropout(output)); fc_dropout is identity in eval mode.
    out_cn = fc_apply(slabs, packed["fc_w"], packed["fc_b"])         # (C, S*B) f32
    C = out_cn.shape[0]
    # (C, S*B) -> (C, S, B) -> (B, C, S)  == output.transpose(2, 1) of the module.
    return jnp.transpose(out_cn.reshape(C, S, B), (2, 0, 1))


# ---------------------------------------------------------------------------
# Pure-JAX reference (PyTorch RNN semantics) for a sanity check
# ---------------------------------------------------------------------------
def rnn_base_reference(params, x, cfg):
    B, _, S = x.shape
    H = cfg["hidden_size"]
    inp = jnp.transpose(x, (0, 2, 1)).astype(jnp.float32)            # (B, S, c_in)
    for dirs in params["layers"]:
        outs_dir = []
        for d, (w_ih, w_hh, b_ih, b_hh) in enumerate(dirs):
            seq = inp if d == 0 else inp[:, ::-1]
            h = jnp.zeros((B, H), jnp.float32)
            hs = []
            for t in range(S):
                h = jnp.tanh(seq[:, t] @ w_ih.T + b_ih + h @ w_hh.T + b_hh)
                hs.append(h)
            hs = jnp.stack(hs, axis=1)
            if d == 1:
                hs = hs[:, ::-1]
            outs_dir.append(hs)
        inp = jnp.concatenate(outs_dir, axis=-1) if len(outs_dir) > 1 else outs_dir[0]
    out = inp @ params["fc_w"].T + params["fc_b"]                    # (B, S, C)
    return jnp.transpose(out, (0, 2, 1))


# ---------------------------------------------------------------------------
if __name__ == "__main__":
    cfg = dict(
        c_in=4,
        c_out=3,
        hidden_size=32,
        n_layers=2,
        bidirectional=True,
        bias=True,
        rnn_dropout=0.0,
        fc_dropout=0.0,
    )

    key = jax.random.PRNGKey(0)
    key, pkey, xkey = jax.random.split(key, 3)

    params = init_params(pkey, cfg)
    packed = pack_params(params, cfg)        # one-time weight packing (off the forward path)

    B, S = 2, 8
    x = jax.random.normal(xkey, (B, cfg["c_in"], S), dtype=jnp.float32)

    out = rnn_base_forward(packed, x, cfg)
    out = jax.block_until_ready(out)
    assert out.shape == (B, cfg["c_out"], S), out.shape

    ref = jax.block_until_ready(rnn_base_reference(params, x, cfg))
    max_err = float(jnp.max(jnp.abs(out - ref)))
    assert max_err < 0.1, f"max abs err {max_err}"

    print("KERNEL_OK")
</pallas_src>

<mosaic_0001>
module attributes {stable_mosaic.version = 11 : i64} {
  func.func @kernel(%arg0: i32, %arg1: i32, %arg2: memref<16x4xbf16, #tpu.memory_space<vmem>>, %arg3: memref<1x4x32xbf16, #tpu.memory_space<vmem>>, %arg4: memref<1x1x32xf32, #tpu.memory_space<vmem>>, %arg5: memref<1x16x32xbf16, #tpu.memory_space<vmem>>) attributes {dimension_semantics = [#tpu.dimension_semantics<parallel>, #tpu.dimension_semantics<parallel>], iteration_bounds = array<i64: 2, 1>, scalar_prefetch = 0 : i64, scratch_operands = 0 : i64, tpu.core_type = #tpu.core_type<tc>, window_params = [{transform_indices = @transform_0, window_bounds = array<i64: 16, 4>}, {transform_indices = @transform_1, window_bounds = array<i64: 1, 4, 32>}, {transform_indices = @transform_2, window_bounds = array<i64: 1, 1, 32>}, {transform_indices = @transform_3, window_bounds = array<i64: 1, 16, 32>}]} {
    %c0 = arith.constant 0 : index
    %c0_0 = arith.constant 0 : index
    %0 = vector.load %arg2[%c0, %c0_0] : memref<16x4xbf16, #tpu.memory_space<vmem>>, vector<16x4xbf16>
    %c0_1 = arith.constant 0 : index
    %c0_2 = arith.constant 0 : index
    %c0_3 = arith.constant 0 : index
    %1 = vector.load %arg3[%c0_1, %c0_2, %c0_3] : memref<1x4x32xbf16, #tpu.memory_space<vmem>>, vector<1x4x32xbf16>
    %2 = vector.shape_cast %1 : vector<1x4x32xbf16> to vector<4x32xbf16>
    %cst = arith.constant dense<0.000000e+00> : vector<16x32xf32>
    %3 = tpu.matmul %0, %2, %cst {dimension_numbers = #tpu.dot_dimension_numbers<[1], [0], [0], [1], [0, 0, 1, 1], [], []>} : vector<16x4xbf16>, vector<4x32xbf16>, vector<16x32xf32> -> vector<16x32xf32>
    %c0_4 = arith.constant 0 : index
    %c0_5 = arith.constant 0 : index
    %c0_6 = arith.constant 0 : index
    %4 = vector.load %arg4[%c0_4, %c0_5, %c0_6] : memref<1x1x32xf32, #tpu.memory_space<vmem>>, vector<1x1x32xf32>
    %5 = vector.shape_cast %4 : vector<1x1x32xf32> to vector<1x32xf32>
    %6 = vector.broadcast %5 : vector<1x32xf32> to vector<16x32xf32>
    %7 = arith.addf %3, %6 : vector<16x32xf32>
    %8 = arith.truncf %7 : vector<16x32xf32> to vector<16x32xbf16>
    %c0_7 = arith.constant 0 : index
    %c0_8 = arith.constant 0 : index
    %c0_9 = arith.constant 0 : index
    %9 = vector.load %arg5[%c0_7, %c0_8, %c0_9] : memref<1x16x32xbf16, #tpu.memory_space<vmem>>, vector<1x16x32xbf16>
    %10 = vector.shape_cast %9 : vector<1x16x32xbf16> to vector<16x32xbf16>
    %11 = vector.shape_cast %8 : vector<16x32xbf16> to vector<1x16x32xbf16>
    tpu.vector_store %arg5[%c0_7, %c0_8, %c0_9], %11 {strides = array<i32>} : memref<1x16x32xbf16, #tpu.memory_space<vmem>>, vector<1x16x32xbf16>,
    return
  }
  func.func @transform_0(%arg0: i32, %arg1: i32) -> (i32, i32) {
    %c0_i32 = arith.constant 0 : i32
    %c0_i32_0 = arith.constant 0 : i32
    return %arg1, %c0_i32 : i32, i32
  }
  func.func @transform_1(%arg0: i32, %arg1: i32) -> (i32, i32, i32) {
    %c0_i32 = arith.constant 0 : i32
    %c0_i32_0 = arith.constant 0 : i32
    %c0_i32_1 = arith.constant 0 : i32
    return %arg0, %c0_i32, %c0_i32_0 : i32, i32, i32
  }
  func.func @transform_2(%arg0: i32, %arg1: i32) -> (i32, i32, i32) {
    %c0_i32 = arith.constant 0 : i32
    %c0_i32_0 = arith.constant 0 : i32
    %c0_i32_1 = arith.constant 0 : i32
    return %arg0, %c0_i32, %c0_i32_0 : i32, i32, i32
  }
  func.func @transform_3(%arg0: i32, %arg1: i32) -> (i32, i32, i32) {
    %c0_i32 = arith.constant 0 : i32
    %c0_i32_0 = arith.constant 0 : i32
    return %arg0, %arg1, %c0_i32 : i32, i32, i32
  }
}

</mosaic_0001>

<bundles_post_ra>
// kernel: tpu_custom_call.1
= control target key start
LH: loop header
LB: loop body
LE: loop exit
PB: predicated region body
PF: predicated region fallthrough
CT: control target
= control target key end

     0   :  { %8 = vsyncpa [#allocation3], 0  ;;  %s655_s0 = inlined_call_operand.vmem [shape: bf16[16,4], index: 0, kind: input, shape index: {}]   ;;  %s656_s1 = inlined_call_operand.vmem [shape: bf16[2,4,32], index: 1, kind: input, shape index: {}]   ;;  %s657_s2 = inlined_call_operand.vmem [shape: f32[2,1,32], index: 2, kind: input, shape index: {}]   ;;  %s658_s3 = inlined_call_operand.hbm [shape: bf16[2,16,32], index: 3, kind: output, shape index: {}]  }
   0x1   :  { %10 = vsyncpa [#allocation3 + $0x1], 0  ;;  %s552_s12 = smov 0   ;;  %s554_s13 = smov 0  }
   0x2   :  { %s556_s14 = smov 0   ;;  %s558_s15 = smov 0  }
   0x3   :  { %s560_s16 = smov 0   ;;  %s562_s17 = smov 0  }
   0x4 LB: > { %s372_s18 = sadd.s32 4294967295, %s528_s17   ;;  %s373_s19 = sadd.s32 4294967294, %s528_s17   ;;  %s528_s17 = sphi %s562_s17, %s16_s17   ;;  %s524_s16 = sphi %s560_s16, %s665_s16   ;;  %s520_s15 = sphi %s558_s15, %s664_s15   ;;  %s516_s14 = sphi %s556_s14, %s663_s14   ;;  %s512_s13 = sphi %s554_s13, %s662_s13   ;;  %s508_s12 = sphi %s552_s12, %s661_s12  }
   0x5   : > { %s28_s20 = sadd.s32 1, %s524_s16  ;;  %s115_s21 = sadd.s32 1, %s516_s14 }
   0x6   : > { %p30_p0 = scmp.ge.s32.totalorder %s28_s20, 2  ;;  %p125_p1 = scmp.ne.s32.totalorder %s516_s14, %s512_s13 }
   0x7   : > { %p126_p2 = scmp.eq.s32.totalorder %s372_s18, 1  ;;  %p131_p3 = scmp.ne.s32.totalorder %s512_s13, %s508_s12 }
   0x8   : > { %s667_s20 = smov (%p30_p0, %s28_s20), 0  ;;  %p132_p5 = scmp.eq.s32.totalorder %s373_s19, 1 }
   0x9   : > { %p592_p4 = por %p126_p2, %p125_p1  ;;  %s110_s23 = ssub.s32 %s524_s16, %s667_s20 }
   0xa   : > { %p377_p6 = scmp.ge.s32.totalorder %s528_s17, 1  ;;  %p113_p7 = scmp.eq.s32.totalorder %s110_s23, 0 }
   0xb   : > { %p599_p8 = por %p132_p5, %p131_p3  ;;  %p172_p9 = scmp.lt.s32.totalorder %s528_s17, 3 }
   0xc   : > { %s605_s25 = scalar_select %p113_p7, %s516_s14, %s115_s21  }
   0xd   : > { %p173_p10 = pnand %p377_p6, %p172_p9 }
   0xe   : > { %p209_p11 = scmp.lt.s32.totalorder (!%p173_p10), %s520_s15, 1  ;;  %s200_s9 = sand.u32 (!%p173_p10), 1, %s512_s13  }
   0xf   : > { %176 = sbr.rel (%p173_p10) target bundleno = 171 (0xab), region = 32  ;;  %s378_s10 = sshll.u32 (!%p173_p10), %s200_s9, 3 }
  0x10   : > { %s391_s11 = sshll.u32 (!%p173_p10), %s520_s15, 3  ;;  %s202_s23 = scalar_lea.vmem (!%p173_p10), [#allocation2], %s378_s10 }
  0x11   : > { %s271_s21 = scalar_lea.hbm (!%p173_p10), %s658_s3, %s391_s11  ;;  %s258_s28 = scalar_lea.sflag (!%p173_p10), [#allocation3], %s200_s9 }
  0x12   : > { %s470_s5 = scalar_lea.hbm (!%p173_p10), %s658_s3, 16 }
  0x14   : > { %s210_s26 = scalar_select %p209_p11, %s520_s15, 1  ;;  %vm234_vm0 = vcmask 1041408   ;;  %v390_v2 = vld [vmem:[%s655_s0] sm:$0xff]  ;;  %vm230_vm1 = vcmask 31744   ;;  %vm254_vm2 = vcmask 257024  }
  0x16   : > { %s379_s27 = sshll.u32 %s210_s26, 1  ;;  %s215_s30 = scalar_lea.vmem %s657_s2, %s210_s26 }
  0x17   : > { %s212_s6 = scalar_lea.vmem %s656_s1, %s379_s27  ;;  %v449_v3 = vld [vmem:[%s215_s30] ss:$0 sm:$0xff]  ;;  %s272_s26 = sshll.u32 %s202_s23, 4  ;;  %s273_s26 = int_to_ptr.vmem [resolvable:$true] %s272_s26 }
  0x18   : > { %v220_v0 = vld [vmem:[%s212_s6] sm:$0x3]  ;;  %s274_s27 = sshll.u32 %s271_s21, 4  ;;  %s275_s27 = int_to_ptr.hbm [resolvable:$true] %s274_s27 }
  0x19   : > { %v236_v1 = vsel %vm234_vm0, %v220_v0, 0  ;;  %s464_s29 = sshra.s32 %s275_s27, 4  ;;  %s465_s29 = int_to_ptr.hbm [resolvable:$true] %s464_s29 }
  0x1a   : > { %245 = vmatpush.bf16.msra.mxu0 %v236_v1  ;;  %s466_s15 = scalar_lea.hbm %s465_s29, 8  ;;  %p471_p1 = scmp.lt.s32.totalorder %s465_s29, %s658_s3 }
  0x1b   : > { %p467_p12 = scmp.ne.s32.totalorder %s465_s29, %s466_s15  ;;  %p472_p2 = scmp.lt.s32.totalorder %s470_s5, %s466_s15 }
  0x1d   : > { %384 = vmatmul.msk.bf16.vlgmr.msra.gmra.mxu0 %vm230_vm1, %v390_v2  ;;  %p468_p13 = pnand %p467_p12, %p592_p4  ;;  %p473_p3 = por %p472_p2, %p471_p1 }
  0x1f   : > { %p469_p0 = pneg %p468_p13 }
  0x21   : > { %p474_p5 = pnand %p473_p3, %p469_p0 }
  0x9a   : > { %v247_v4 = vpop.f32.mrf.mxu0 }
  0x9b   : > { %v248_v5 = vadd.f32 %v449_v3, %v247_v4 }
  0x9d   : > { %v252_v6 = vpack.c.bf16 %v248_v5, %v248_v5 }
  0x9f   : > { %255 = vst.msk [vmem:[%s202_s23] sm:$0xf] %vm254_vm2, %v252_v6 }
  0xa2   : > { %v249_v7 = vpop.f32.mrf.mxu0 }
  0xa3   : > { %v250_v8 = vadd.f32 %v449_v3, %v249_v7 }
  0xa5   : > { %v253_v9 = vpack.c.bf16 %v250_v8, %v250_v8 }
  0xa7   : > { %256 = vst.msk [vmem:[%s202_s23 + $0x4] sm:$0xf] %vm254_vm2, %v253_v9 }
  0xa8   : > { %477 = shalt.err (!%p474_p5)
}
  0xa9   : > { %s530_s8 = smov 64   ;;  %s531_s9 = smov 4  }
  0xaa   : > { %392 = dma.vmem_to_hbm [thread:$0]  (%p592_p4), %s273_s26, 128, %s275_s27, %s258_s28, %s530_s8, %s530_s8, %s531_s9  }
  0xab PF: > { %p398_p6 = scmp.ge.s32.totalorder %s528_s17, 2  ;;  %s289_s10 = sand.u32 1, %s508_s12  }
  0xac   : > { %s290_s11 = scalar_lea.sflag [#allocation3], %s289_s10 }
  0xad   : > { %p395_p7 = pnand %p398_p6, %p599_p8 }
  0xaf   : > { %p396_p9 = pneg %p395_p7 }
  0xb1   : > { %503 = dma.done.wait (%p396_p9), %s290_s11, 128  }
  0xb2   : > { %505 = vsyncadd (%p396_p9), %s290_s11, 4294967168  ;;  %s16_s17 = sadd.s32 1, %s528_s17   ;;  %s661_s12 = smov %s512_s13 }
  0xb3   : > { %p13_p10 = scmp.ge.s32.totalorder %s16_s17, 4   ;;  %s662_s13 = smov %s516_s14 }
  0xb4   : > { %s663_s14 = smov %s605_s25  ;;  %s664_s15 = smov %s524_s16 }
  0xb5   : > { %s665_s16 = smov %s667_s20  ;;  %15 = sbr.rel (!%p13_p10) target bundleno = 4 (0x4), region = 73 }
  0xba   :  { %296 = vsyncpa [#allocation3], 1 }
  0xbb   :  { %298 = vsyncpa [#allocation3 + $0x1], 1 }

</bundles_post_ra>
